<compile_context>
chip_gen: v7x
topology: tpu7x:2x2x1
jax: 0.10.0
libtpu: 0.0.40
codegen_flags: <defaults>
</compile_context>

<pallas_src>
import itertools

import jax
import jax.numpy as jnp
from jax import lax
from jax.experimental import pallas as pl
from jax.experimental.pallas import tpu as pltpu

# ---- small config consistent with AttentionSubsample(__init__) ----
B = 2
IN_DIM = 32
OUT_DIM = 64
KEY_DIM = 16
NUM_HEADS = 2
ATTN_RATIO = 2
STRIDE = 2
RESOLUTION = 4
RESOLUTION_ = (RESOLUTION - 1) // STRIDE + 1          # 2
N = RESOLUTION * RESOLUTION                           # 16
N_ = RESOLUTION_ * RESOLUTION_                        # 4
D = int(ATTN_RATIO * KEY_DIM)                         # 32
DH = D * NUM_HEADS                                    # 64
NH_KD = KEY_DIM * NUM_HEADS                           # 32
H_KV = DH + NH_KD                                     # 96
SCALE = KEY_DIM ** (-0.5)


# ------------------------- parameter construction -------------------------
def _fuse_linear_bn(key, in_f, out_f, bn_weight_init=1.0, eps=1e-5):
    """LinearNorm = Linear(bias=False) -> BatchNorm1d, fused (eval-mode BN)."""
    kw, km, kv_ = jax.random.split(key, 3)
    W = jax.random.normal(kw, (in_f, out_f), jnp.float32) * 0.02
    gamma = jnp.full((out_f,), bn_weight_init, jnp.float32)
    beta = jnp.zeros((out_f,), jnp.float32)             # nn.init.constant_(bn.bias, 0)
    running_mean = jax.random.normal(km, (out_f,), jnp.float32) * 0.05
    running_var = 1.0 + jax.random.uniform(kv_, (out_f,), jnp.float32) * 0.1
    s = gamma / jnp.sqrt(running_var + eps)
    return W * s[None, :], beta - running_mean * s


def _attention_bias_idxs():
    """Replicates the itertools offset bookkeeping in __init__."""
    points = list(itertools.product(range(RESOLUTION), range(RESOLUTION)))
    points_ = list(itertools.product(range(RESOLUTION_), range(RESOLUTION_)))
    attention_offsets = {}
    idxs = []
    for p1 in points_:
        for p2 in points:
            size = 1
            offset = (abs(p1[0] * STRIDE - p2[0] + (size - 1) / 2),
                      abs(p1[1] * STRIDE - p2[1] + (size - 1) / 2))
            if offset not in attention_offsets:
                attention_offsets[offset] = len(attention_offsets)
            idxs.append(attention_offsets[offset])
    return jnp.array(idxs, jnp.int32).reshape(N_, N), len(attention_offsets)


def make_params(key):
    k_kv, k_q, k_p, k_ab = jax.random.split(key, 4)
    wkv, bkv = _fuse_linear_bn(k_kv, IN_DIM, H_KV)       # kv = LinearNorm(in_dim, dh+nh_kd)
    wq, bq = _fuse_linear_bn(k_q, IN_DIM, NH_KD)         # q  = Subsample -> LinearNorm(in_dim, nh_kd)
    wp, bp = _fuse_linear_bn(k_p, DH, OUT_DIM)           # proj = Hardswish -> LinearNorm(dh, out_dim)
    idxs, n_off = _attention_bias_idxs()
    ab_param = jax.random.normal(k_ab, (NUM_HEADS, n_off), jnp.float32) * 0.02
    bias = ab_param[:, idxs]                             # (num_heads, N_, N) — gather is JAX glue
    return wkv, bkv, wq, bq, bias, wp, bp


def _prep_params(params):
    """Wrapper-side (zero-cost) weight permutations so the kernel never slices
    or concatenates along the lane axis."""
    wkv, bkv, wq, bq, bias, wp, bp = params
    wkv_h = wkv.reshape(IN_DIM, NUM_HEADS, KEY_DIM + D)
    bkv_h = bkv.reshape(NUM_HEADS, KEY_DIM + D)
    wk = jnp.transpose(wkv_h[:, :, :KEY_DIM], (1, 0, 2))                 # (H, IN_DIM, KEY_DIM)
    wv = jnp.transpose(wkv_h[:, :, KEY_DIM:], (1, 0, 2))                 # (H, IN_DIM, D)
    bk = bkv_h[:, :KEY_DIM].reshape(NUM_HEADS, 1, KEY_DIM)               # (H, 1, KEY_DIM)
    bv = bkv_h[:, KEY_DIM:].reshape(NUM_HEADS, 1, D)                     # (H, 1, D)
    wq_h = jnp.transpose(wq.reshape(IN_DIM, NUM_HEADS, KEY_DIM), (1, 0, 2))  # (H, IN_DIM, KEY_DIM)
    bq_h = bq.reshape(NUM_HEADS, 1, KEY_DIM)                             # (H, 1, KEY_DIM)
    wp_h = wp.reshape(NUM_HEADS, D, OUT_DIM)                             # (H, D, OUT_DIM)
    bp2 = bp.reshape(1, OUT_DIM)
    return wk, bk, wv, bv, wq_h, bq_h, bias, wp_h, bp2


# ------------------------------ Pallas kernel ------------------------------
def _attn_subsample_kernel(x_ref, xs_ref, wk_ref, bk_ref, wv_ref, bv_ref,
                           wq_ref, bq_ref, bias_ref, wp_ref, bp_ref, o_ref):
    x = x_ref[...]                                   # (B*N,  IN_DIM)
    xs = xs_ref[...]                                 # (B*N_, IN_DIM)  (already subsampled)
    bp = bp_ref[...]                                 # (1, OUT_DIM)

    # Batch-folded per-head projections (BN already fused into W, b):
    # the MXU sees 32 / 8 LHS rows instead of 16 / 4 per former grid step.
    ks, vs, qs = [], [], []
    for h in range(NUM_HEADS):
        ks.append(jnp.dot(x, wk_ref[h], preferred_element_type=jnp.float32)
                  + bk_ref[h])                       # (B*N,  KEY_DIM)
        vs.append(jnp.dot(x, wv_ref[h], preferred_element_type=jnp.float32)
                  + bv_ref[h])                       # (B*N,  D)
        qs.append(jnp.dot(xs, wq_ref[h], preferred_element_type=jnp.float32)
                  + bq_ref[h])                       # (B*N_, KEY_DIM)

    # Attention + output projection, accumulated per head (no lane concat).
    for b in range(B):
        acc = None
        for h in range(NUM_HEADS):
            q_bh = qs[h][b * N_:(b + 1) * N_, :]     # (N_, KEY_DIM)  sublane slice
            k_bh = ks[h][b * N:(b + 1) * N, :]       # (N,  KEY_DIM)  tile-aligned rows
            v_bh = vs[h][b * N:(b + 1) * N, :]       # (N,  D)

            # q @ k^T via dot_general contracting last dims (no explicit transpose)
            s = lax.dot_general(q_bh, k_bh, (((1,), (1,)), ((), ())),
                                preferred_element_type=jnp.float32)
            s = s * SCALE + bias_ref[h]              # (N_, N)
            s = s - jnp.max(s, axis=-1, keepdims=True)
            p = jnp.exp(s)
            # one reciprocal per row + multiply instead of per-element divide
            # (approx=True would move it fully onto the EUP if tolerances allow)
            inv = pl.reciprocal(jnp.sum(p, axis=-1, keepdims=True), approx=False)
            attn = p * inv                           # softmax over keys

            o_h = jnp.dot(attn, v_bh, preferred_element_type=jnp.float32)     # (N_, D)
            o_h = o_h * jnp.clip(o_h + 3.0, 0.0, 6.0) * (1.0 / 6.0)           # Hardswish
            part = jnp.dot(o_h, wp_ref[h], preferred_element_type=jnp.float32)  # (N_, OUT_DIM)
            acc = part if acc is None else acc + part
        o_ref[b] = (acc + bp).astype(o_ref.dtype)    # (N_, OUT_DIM)


def attention_subsample(x, params):
    wk, bk, wv, bv, wq_h, bq_h, bias, wp_h, bp2 = _prep_params(params)

    # Subsample (glue): view(B, res, res, C)[:, ::stride, ::stride] -> (B*N_, C)
    xs2d = (x.reshape(B, RESOLUTION, RESOLUTION, IN_DIM)[:, ::STRIDE, ::STRIDE]
            .reshape(B * N_, IN_DIM))
    x2d = x.reshape(B * N, IN_DIM)

    vmem = pl.BlockSpec(memory_space=pltpu.MemorySpace.VMEM)
    return pl.pallas_call(
        _attn_subsample_kernel,
        out_shape=jax.ShapeDtypeStruct((B, N_, OUT_DIM), jnp.float32),
        in_specs=[vmem] * 11,
        out_specs=vmem,
    )(x2d, xs2d, wk, bk, wv, bv, wq_h, bq_h, bias, wp_h, bp2)


# ------------------------------ JAX reference ------------------------------
def reference(x, params):
    wkv, bkv, wq, bq, bias, wp, bp = params
    kv = x @ wkv + bkv                                           # (B, N, H_KV)
    kv = kv.reshape(B, N, NUM_HEADS, KEY_DIM + D)
    k = kv[..., :KEY_DIM].transpose(0, 2, 1, 3)                  # (B, nh, N, kd)
    v = kv[..., KEY_DIM:].transpose(0, 2, 1, 3)                  # (B, nh, N, d)
    xs = x.reshape(B, RESOLUTION, RESOLUTION, IN_DIM)[:, ::STRIDE, ::STRIDE].reshape(B, N_, IN_DIM)
    q = (xs @ wq + bq).reshape(B, N_, NUM_HEADS, KEY_DIM).transpose(0, 2, 1, 3)
    attn = jnp.einsum('bhqd,bhkd->bhqk', q, k) * SCALE + bias[None]
    attn = jax.nn.softmax(attn, axis=-1)
    o = jnp.einsum('bhqk,bhkd->bhqd', attn, v).transpose(0, 2, 1, 3).reshape(B, N_, DH)
    o = o * jnp.clip(o + 3.0, 0.0, 6.0) / 6.0                    # Hardswish
    return o @ wp + bp


if __name__ == "__main__":
    key = jax.random.PRNGKey(0)
    k_x, k_p = jax.random.split(key)
    x = jax.random.normal(k_x, (B, N, IN_DIM), jnp.float32)
    params = make_params(k_p)

    out = attention_subsample(x, params)
    out = jax.block_until_ready(out)

    ref = reference(x, params)
    assert out.shape == (B, N_, OUT_DIM)
    assert jnp.allclose(out, ref, rtol=1e-4, atol=1e-4), "mismatch vs JAX reference"
    print("KERNEL_OK")
</pallas_src>

<mosaic_0001>
module attributes {stable_mosaic.version = 11 : i64} {
  func.func @_attn_subsample_kernel(%arg0: memref<32x32xf32, #tpu.memory_space<vmem>>, %arg1: memref<8x32xf32, #tpu.memory_space<vmem>>, %arg2: memref<2x32x16xf32, #tpu.memory_space<vmem>>, %arg3: memref<2x1x16xf32, #tpu.memory_space<vmem>>, %arg4: memref<2x32x32xf32, #tpu.memory_space<vmem>>, %arg5: memref<2x1x32xf32, #tpu.memory_space<vmem>>, %arg6: memref<2x32x16xf32, #tpu.memory_space<vmem>>, %arg7: memref<2x1x16xf32, #tpu.memory_space<vmem>>, %arg8: memref<2x4x16xf32, #tpu.memory_space<vmem>>, %arg9: memref<2x32x64xf32, #tpu.memory_space<vmem>>, %arg10: memref<1x64xf32, #tpu.memory_space<vmem>>, %arg11: memref<2x4x64xf32, #tpu.memory_space<vmem>>) attributes {dimension_semantics = [], scalar_prefetch = 0 : i64, scratch_operands = 0 : i64, tpu.core_type = #tpu.core_type<tc>} {
    %c0 = arith.constant 0 : index
    %c0_0 = arith.constant 0 : index
    %0 = vector.load %arg0[%c0, %c0_0] : memref<32x32xf32, #tpu.memory_space<vmem>>, vector<32x32xf32>
    %c0_1 = arith.constant 0 : index
    %c0_2 = arith.constant 0 : index
    %1 = vector.load %arg1[%c0_1, %c0_2] : memref<8x32xf32, #tpu.memory_space<vmem>>, vector<8x32xf32>
    %c0_3 = arith.constant 0 : index
    %c0_4 = arith.constant 0 : index
    %2 = vector.load %arg10[%c0_3, %c0_4] : memref<1x64xf32, #tpu.memory_space<vmem>>, vector<1x64xf32>
    %c0_5 = arith.constant 0 : index
    %c0_6 = arith.constant 0 : index
    %c0_7 = arith.constant 0 : index
    %3 = vector.load %arg2[%c0_5, %c0_6, %c0_7] : memref<2x32x16xf32, #tpu.memory_space<vmem>>, vector<1x32x16xf32>
    %4 = vector.shape_cast %3 : vector<1x32x16xf32> to vector<32x16xf32>
    %cst = arith.constant dense<0.000000e+00> : vector<32x16xf32>
    %5 = tpu.matmul %0, %4, %cst {dimension_numbers = #tpu.dot_dimension_numbers<[1], [0], [0], [1], [0, 0, 1, 1], [], []>} : vector<32x32xf32>, vector<32x16xf32>, vector<32x16xf32> -> vector<32x16xf32>
    %c0_8 = arith.constant 0 : index
    %c0_9 = arith.constant 0 : index
    %c0_10 = arith.constant 0 : index
    %6 = vector.load %arg3[%c0_8, %c0_9, %c0_10] : memref<2x1x16xf32, #tpu.memory_space<vmem>>, vector<1x1x16xf32>
    %7 = vector.shape_cast %6 : vector<1x1x16xf32> to vector<1x16xf32>
    %8 = vector.broadcast %7 : vector<1x16xf32> to vector<32x16xf32>
    %9 = arith.addf %5, %8 : vector<32x16xf32>
    %c0_11 = arith.constant 0 : index
    %c0_12 = arith.constant 0 : index
    %c0_13 = arith.constant 0 : index
    %10 = vector.load %arg4[%c0_11, %c0_12, %c0_13] : memref<2x32x32xf32, #tpu.memory_space<vmem>>, vector<1x32x32xf32>
    %11 = vector.shape_cast %10 : vector<1x32x32xf32> to vector<32x32xf32>
    %cst_14 = arith.constant dense<0.000000e+00> : vector<32x32xf32>
    %12 = tpu.matmul %0, %11, %cst_14 {dimension_numbers = #tpu.dot_dimension_numbers<[1], [0], [0], [1], [0, 0, 1, 1], [], []>} : vector<32x32xf32>, vector<32x32xf32>, vector<32x32xf32> -> vector<32x32xf32>
    %c0_15 = arith.constant 0 : index
    %c0_16 = arith.constant 0 : index
    %c0_17 = arith.constant 0 : index
    %13 = vector.load %arg5[%c0_15, %c0_16, %c0_17] : memref<2x1x32xf32, #tpu.memory_space<vmem>>, vector<1x1x32xf32>
    %14 = vector.shape_cast %13 : vector<1x1x32xf32> to vector<1x32xf32>
    %15 = vector.broadcast %14 : vector<1x32xf32> to vector<32x32xf32>
    %16 = arith.addf %12, %15 : vector<32x32xf32>
    %c0_18 = arith.constant 0 : index
    %c0_19 = arith.constant 0 : index
    %c0_20 = arith.constant 0 : index
    %17 = vector.load %arg6[%c0_18, %c0_19, %c0_20] : memref<2x32x16xf32, #tpu.memory_space<vmem>>, vector<1x32x16xf32>
    %18 = vector.shape_cast %17 : vector<1x32x16xf32> to vector<32x16xf32>
    %cst_21 = arith.constant dense<0.000000e+00> : vector<8x16xf32>
    %19 = tpu.matmul %1, %18, %cst_21 {dimension_numbers = #tpu.dot_dimension_numbers<[1], [0], [0], [1], [0, 0, 1, 1], [], []>} : vector<8x32xf32>, vector<32x16xf32>, vector<8x16xf32> -> vector<8x16xf32>
    %c0_22 = arith.constant 0 : index
    %c0_23 = arith.constant 0 : index
    %c0_24 = arith.constant 0 : index
    %20 = vector.load %arg7[%c0_22, %c0_23, %c0_24] : memref<2x1x16xf32, #tpu.memory_space<vmem>>, vector<1x1x16xf32>
    %21 = vector.shape_cast %20 : vector<1x1x16xf32> to vector<1x16xf32>
    %22 = vector.broadcast %21 : vector<1x16xf32> to vector<8x16xf32>
    %23 = arith.addf %19, %22 : vector<8x16xf32>
    %c1 = arith.constant 1 : index
    %c0_25 = arith.constant 0 : index
    %c0_26 = arith.constant 0 : index
    %24 = vector.load %arg2[%c1, %c0_25, %c0_26] : memref<2x32x16xf32, #tpu.memory_space<vmem>>, vector<1x32x16xf32>
    %25 = vector.shape_cast %24 : vector<1x32x16xf32> to vector<32x16xf32>
    %cst_27 = arith.constant dense<0.000000e+00> : vector<32x16xf32>
    %26 = tpu.matmul %0, %25, %cst_27 {dimension_numbers = #tpu.dot_dimension_numbers<[1], [0], [0], [1], [0, 0, 1, 1], [], []>} : vector<32x32xf32>, vector<32x16xf32>, vector<32x16xf32> -> vector<32x16xf32>
    %c1_28 = arith.constant 1 : index
    %c0_29 = arith.constant 0 : index
    %c0_30 = arith.constant 0 : index
    %27 = vector.load %arg3[%c1_28, %c0_29, %c0_30] : memref<2x1x16xf32, #tpu.memory_space<vmem>>, vector<1x1x16xf32>
    %28 = vector.shape_cast %27 : vector<1x1x16xf32> to vector<1x16xf32>
    %29 = vector.broadcast %28 : vector<1x16xf32> to vector<32x16xf32>
    %30 = arith.addf %26, %29 : vector<32x16xf32>
    %c1_31 = arith.constant 1 : index
    %c0_32 = arith.constant 0 : index
    %c0_33 = arith.constant 0 : index
    %31 = vector.load %arg4[%c1_31, %c0_32, %c0_33] : memref<2x32x32xf32, #tpu.memory_space<vmem>>, vector<1x32x32xf32>
    %32 = vector.shape_cast %31 : vector<1x32x32xf32> to vector<32x32xf32>
    %cst_34 = arith.constant dense<0.000000e+00> : vector<32x32xf32>
    %33 = tpu.matmul %0, %32, %cst_34 {dimension_numbers = #tpu.dot_dimension_numbers<[1], [0], [0], [1], [0, 0, 1, 1], [], []>} : vector<32x32xf32>, vector<32x32xf32>, vector<32x32xf32> -> vector<32x32xf32>
    %c1_35 = arith.constant 1 : index
    %c0_36 = arith.constant 0 : index
    %c0_37 = arith.constant 0 : index
    %34 = vector.load %arg5[%c1_35, %c0_36, %c0_37] : memref<2x1x32xf32, #tpu.memory_space<vmem>>, vector<1x1x32xf32>
    %35 = vector.shape_cast %34 : vector<1x1x32xf32> to vector<1x32xf32>
    %36 = vector.broadcast %35 : vector<1x32xf32> to vector<32x32xf32>
    %37 = arith.addf %33, %36 : vector<32x32xf32>
    %c1_38 = arith.constant 1 : index
    %c0_39 = arith.constant 0 : index
    %c0_40 = arith.constant 0 : index
    %38 = vector.load %arg6[%c1_38, %c0_39, %c0_40] : memref<2x32x16xf32, #tpu.memory_space<vmem>>, vector<1x32x16xf32>
    %39 = vector.shape_cast %38 : vector<1x32x16xf32> to vector<32x16xf32>
    %cst_41 = arith.constant dense<0.000000e+00> : vector<8x16xf32>
    %40 = tpu.matmul %1, %39, %cst_41 {dimension_numbers = #tpu.dot_dimension_numbers<[1], [0], [0], [1], [0, 0, 1, 1], [], []>} : vector<8x32xf32>, vector<32x16xf32>, vector<8x16xf32> -> vector<8x16xf32>
    %c1_42 = arith.constant 1 : index
    %c0_43 = arith.constant 0 : index
    %c0_44 = arith.constant 0 : index
    %41 = vector.load %arg7[%c1_42, %c0_43, %c0_44] : memref<2x1x16xf32, #tpu.memory_space<vmem>>, vector<1x1x16xf32>
    %42 = vector.shape_cast %41 : vector<1x1x16xf32> to vector<1x16xf32>
    %43 = vector.broadcast %42 : vector<1x16xf32> to vector<8x16xf32>
    %44 = arith.addf %40, %43 : vector<8x16xf32>
    %45 = vector.extract_strided_slice %23 {offsets = [0, 0], sizes = [4, 16], strides = [1, 1]} : vector<8x16xf32> to vector<4x16xf32>
    %46 = vector.extract_strided_slice %9 {offsets = [0, 0], sizes = [16, 16], strides = [1, 1]} : vector<32x16xf32> to vector<16x16xf32>
    %47 = vector.extract_strided_slice %16 {offsets = [0, 0], sizes = [16, 32], strides = [1, 1]} : vector<32x32xf32> to vector<16x32xf32>
    %cst_45 = arith.constant dense<0.000000e+00> : vector<4x16xf32>
    %48 = tpu.matmul %45, %46, %cst_45 {dimension_numbers = #tpu.dot_dimension_numbers<[1], [1], [0], [0], [0, 0, 1, 0], [], []>} : vector<4x16xf32>, vector<16x16xf32>, vector<4x16xf32> -> vector<4x16xf32>
    %cst_46 = arith.constant 2.500000e-01 : f32
    %49 = vector.broadcast %cst_46 : f32 to vector<4x16xf32>
    %50 = arith.mulf %48, %49 : vector<4x16xf32>
    %c0_47 = arith.constant 0 : index
    %c0_48 = arith.constant 0 : index
    %c0_49 = arith.constant 0 : index
    %51 = vector.load %arg8[%c0_47, %c0_48, %c0_49] : memref<2x4x16xf32, #tpu.memory_space<vmem>>, vector<1x4x16xf32>
    %52 = vector.shape_cast %51 : vector<1x4x16xf32> to vector<4x16xf32>
    %53 = arith.addf %50, %52 : vector<4x16xf32>
    %cst_50 = arith.constant dense<0xFF800000> : vector<4xf32>
    %54 = vector.multi_reduction <maximumf>, %53, %cst_50 [1] : vector<4x16xf32> to vector<4xf32>
    %55 = vector.shape_cast %54 : vector<4xf32> to vector<4x1xf32>
    %56 = vector.broadcast %55 : vector<4x1xf32> to vector<4x16xf32>
    %57 = arith.subf %53, %56 : vector<4x16xf32>
    %58 = math.exp %57 : vector<4x16xf32>
    %cst_51 = arith.constant dense<0.000000e+00> : vector<4xf32>
    %59 = vector.multi_reduction <add>, %58, %cst_51 [1] : vector<4x16xf32> to vector<4xf32>
    %60 = vector.shape_cast %59 : vector<4xf32> to vector<4x1xf32>
    %61 = tpu.reciprocal %60 : vector<4x1xf32> -> vector<4x1xf32>
    %62 = vector.broadcast %61 : vector<4x1xf32> to vector<4x16xf32>
    %63 = arith.mulf %58, %62 : vector<4x16xf32>
    %cst_52 = arith.constant dense<0.000000e+00> : vector<4x32xf32>
    %64 = tpu.matmul %63, %47, %cst_52 {dimension_numbers = #tpu.dot_dimension_numbers<[1], [0], [0], [1], [0, 0, 1, 1], [], []>} : vector<4x16xf32>, vector<16x32xf32>, vector<4x32xf32> -> vector<4x32xf32>
    %cst_53 = arith.constant 3.000000e+00 : f32
    %65 = vector.broadcast %cst_53 : f32 to vector<4x32xf32>
    %66 = arith.addf %64, %65 : vector<4x32xf32>
    %cst_54 = arith.constant 0.000000e+00 : f32
    %cst_55 = arith.constant 6.000000e+00 : f32
    %67 = vector.broadcast %cst_54 : f32 to vector<4x32xf32>
    %68 = arith.maximumf %67, %66 : vector<4x32xf32>
    %69 = vector.broadcast %cst_55 : f32 to vector<4x32xf32>
    %70 = arith.minimumf %69, %68 : vector<4x32xf32>
    %71 = arith.mulf %64, %70 : vector<4x32xf32>
    %cst_56 = arith.constant 0.166666672 : f32
    %72 = vector.broadcast %cst_56 : f32 to vector<4x32xf32>
    %73 = arith.mulf %71, %72 : vector<4x32xf32>
    %c0_57 = arith.constant 0 : index
    %c0_58 = arith.constant 0 : index
    %c0_59 = arith.constant 0 : index
    %74 = vector.load %arg9[%c0_57, %c0_58, %c0_59] : memref<2x32x64xf32, #tpu.memory_space<vmem>>, vector<1x32x64xf32>
    %75 = vector.shape_cast %74 : vector<1x32x64xf32> to vector<32x64xf32>
    %cst_60 = arith.constant dense<0.000000e+00> : vector<4x64xf32>
    %76 = tpu.matmul %73, %75, %cst_60 {dimension_numbers = #tpu.dot_dimension_numbers<[1], [0], [0], [1], [0, 0, 1, 1], [], []>} : vector<4x32xf32>, vector<32x64xf32>, vector<4x64xf32> -> vector<4x64xf32>
    %77 = vector.extract_strided_slice %44 {offsets = [0, 0], sizes = [4, 16], strides = [1, 1]} : vector<8x16xf32> to vector<4x16xf32>
    %78 = vector.extract_strided_slice %30 {offsets = [0, 0], sizes = [16, 16], strides = [1, 1]} : vector<32x16xf32> to vector<16x16xf32>
    %79 = vector.extract_strided_slice %37 {offsets = [0, 0], sizes = [16, 32], strides = [1, 1]} : vector<32x32xf32> to vector<16x32xf32>
    %cst_61 = arith.constant dense<0.000000e+00> : vector<4x16xf32>
    %80 = tpu.matmul %77, %78, %cst_61 {dimension_numbers = #tpu.dot_dimension_numbers<[1], [1], [0], [0], [0, 0, 1, 0], [], []>} : vector<4x16xf32>, vector<16x16xf32>, vector<4x16xf32> -> vector<4x16xf32>
    %cst_62 = arith.constant 2.500000e-01 : f32
    %81 = vector.broadcast %cst_62 : f32 to vector<4x16xf32>
    %82 = arith.mulf %80, %81 : vector<4x16xf32>
    %c1_63 = arith.constant 1 : index
    %c0_64 = arith.constant 0 : index
    %c0_65 = arith.constant 0 : index
    %83 = vector.load %arg8[%c1_63, %c0_64, %c0_65] : memref<2x4x16xf32, #tpu.memory_space<vmem>>, vector<1x4x16xf32>
    %84 = vector.shape_cast %83 : vector<1x4x16xf32> to vector<4x16xf32>
    %85 = arith.addf %82, %84 : vector<4x16xf32>
    %cst_66 = arith.constant dense<0xFF800000> : vector<4xf32>
    %86 = vector.multi_reduction <maximumf>, %85, %cst_66 [1] : vector<4x16xf32> to vector<4xf32>
    %87 = vector.shape_cast %86 : vector<4xf32> to vector<4x1xf32>
    %88 = vector.broadcast %87 : vector<4x1xf32> to vector<4x16xf32>
    %89 = arith.subf %85, %88 : vector<4x16xf32>
    %90 = math.exp %89 : vector<4x16xf32>
    %cst_67 = arith.constant dense<0.000000e+00> : vector<4xf32>
    %91 = vector.multi_reduction <add>, %90, %cst_67 [1] : vector<4x16xf32> to vector<4xf32>
    %92 = vector.shape_cast %91 : vector<4xf32> to vector<4x1xf32>
    %93 = tpu.reciprocal %92 : vector<4x1xf32> -> vector<4x1xf32>
    %94 = vector.broadcast %93 : vector<4x1xf32> to vector<4x16xf32>
    %95 = arith.mulf %90, %94 : vector<4x16xf32>
    %cst_68 = arith.constant dense<0.000000e+00> : vector<4x32xf32>
    %96 = tpu.matmul %95, %79, %cst_68 {dimension_numbers = #tpu.dot_dimension_numbers<[1], [0], [0], [1], [0, 0, 1, 1], [], []>} : vector<4x16xf32>, vector<16x32xf32>, vector<4x32xf32> -> vector<4x32xf32>
    %cst_69 = arith.constant 3.000000e+00 : f32
    %97 = vector.broadcast %cst_69 : f32 to vector<4x32xf32>
    %98 = arith.addf %96, %97 : vector<4x32xf32>
    %cst_70 = arith.constant 0.000000e+00 : f32
    %cst_71 = arith.constant 6.000000e+00 : f32
    %99 = vector.broadcast %cst_70 : f32 to vector<4x32xf32>
    %100 = arith.maximumf %99, %98 : vector<4x32xf32>
    %101 = vector.broadcast %cst_71 : f32 to vector<4x32xf32>
    %102 = arith.minimumf %101, %100 : vector<4x32xf32>
    %103 = arith.mulf %96, %102 : vector<4x32xf32>
    %cst_72 = arith.constant 0.166666672 : f32
    %104 = vector.broadcast %cst_72 : f32 to vector<4x32xf32>
    %105 = arith.mulf %103, %104 : vector<4x32xf32>
    %c1_73 = arith.constant 1 : index
    %c0_74 = arith.constant 0 : index
    %c0_75 = arith.constant 0 : index
    %106 = vector.load %arg9[%c1_73, %c0_74, %c0_75] : memref<2x32x64xf32, #tpu.memory_space<vmem>>, vector<1x32x64xf32>
    %107 = vector.shape_cast %106 : vector<1x32x64xf32> to vector<32x64xf32>
    %cst_76 = arith.constant dense<0.000000e+00> : vector<4x64xf32>
    %108 = tpu.matmul %105, %107, %cst_76 {dimension_numbers = #tpu.dot_dimension_numbers<[1], [0], [0], [1], [0, 0, 1, 1], [], []>} : vector<4x32xf32>, vector<32x64xf32>, vector<4x64xf32> -> vector<4x64xf32>
    %109 = arith.addf %76, %108 : vector<4x64xf32>
    %110 = vector.broadcast %2 : vector<1x64xf32> to vector<4x64xf32>
    %111 = arith.addf %109, %110 : vector<4x64xf32>
    %c0_77 = arith.constant 0 : index
    %c0_78 = arith.constant 0 : index
    %c0_79 = arith.constant 0 : index
    %112 = vector.load %arg11[%c0_77, %c0_78, %c0_79] : memref<2x4x64xf32, #tpu.memory_space<vmem>>, vector<1x4x64xf32>
    %113 = vector.shape_cast %112 : vector<1x4x64xf32> to vector<4x64xf32>
    %114 = vector.shape_cast %111 : vector<4x64xf32> to vector<1x4x64xf32>
    tpu.vector_store %arg11[%c0_77, %c0_78, %c0_79], %114 {strides = array<i32>} : memref<2x4x64xf32, #tpu.memory_space<vmem>>, vector<1x4x64xf32>,
    %115 = vector.extract_strided_slice %23 {offsets = [4, 0], sizes = [4, 16], strides = [1, 1]} : vector<8x16xf32> to vector<4x16xf32>
    %116 = vector.extract_strided_slice %9 {offsets = [16, 0], sizes = [16, 16], strides = [1, 1]} : vector<32x16xf32> to vector<16x16xf32>
    %117 = vector.extract_strided_slice %16 {offsets = [16, 0], sizes = [16, 32], strides = [1, 1]} : vector<32x32xf32> to vector<16x32xf32>
    %cst_80 = arith.constant dense<0.000000e+00> : vector<4x16xf32>
    %118 = tpu.matmul %115, %116, %cst_80 {dimension_numbers = #tpu.dot_dimension_numbers<[1], [1], [0], [0], [0, 0, 1, 0], [], []>} : vector<4x16xf32>, vector<16x16xf32>, vector<4x16xf32> -> vector<4x16xf32>
    %cst_81 = arith.constant 2.500000e-01 : f32
    %119 = vector.broadcast %cst_81 : f32 to vector<4x16xf32>
    %120 = arith.mulf %118, %119 : vector<4x16xf32>
    %c0_82 = arith.constant 0 : index
    %c0_83 = arith.constant 0 : index
    %c0_84 = arith.constant 0 : index
    %121 = vector.load %arg8[%c0_82, %c0_83, %c0_84] : memref<2x4x16xf32, #tpu.memory_space<vmem>>, vector<1x4x16xf32>
    %122 = vector.shape_cast %121 : vector<1x4x16xf32> to vector<4x16xf32>
    %123 = arith.addf %120, %122 : vector<4x16xf32>
    %cst_85 = arith.constant dense<0xFF800000> : vector<4xf32>
    %124 = vector.multi_reduction <maximumf>, %123, %cst_85 [1] : vector<4x16xf32> to vector<4xf32>
    %125 = vector.shape_cast %124 : vector<4xf32> to vector<4x1xf32>
    %126 = vector.broadcast %125 : vector<4x1xf32> to vector<4x16xf32>
    %127 = arith.subf %123, %126 : vector<4x16xf32>
    %128 = math.exp %127 : vector<4x16xf32>
    %cst_86 = arith.constant dense<0.000000e+00> : vector<4xf32>
    %129 = vector.multi_reduction <add>, %128, %cst_86 [1] : vector<4x16xf32> to vector<4xf32>
    %130 = vector.shape_cast %129 : vector<4xf32> to vector<4x1xf32>
    %131 = tpu.reciprocal %130 : vector<4x1xf32> -> vector<4x1xf32>
    %132 = vector.broadcast %131 : vector<4x1xf32> to vector<4x16xf32>
    %133 = arith.mulf %128, %132 : vector<4x16xf32>
    %cst_87 = arith.constant dense<0.000000e+00> : vector<4x32xf32>
    %134 = tpu.matmul %133, %117, %cst_87 {dimension_numbers = #tpu.dot_dimension_numbers<[1], [0], [0], [1], [0, 0, 1, 1], [], []>} : vector<4x16xf32>, vector<16x32xf32>, vector<4x32xf32> -> vector<4x32xf32>
    %cst_88 = arith.constant 3.000000e+00 : f32
    %135 = vector.broadcast %cst_88 : f32 to vector<4x32xf32>
    %136 = arith.addf %134, %135 : vector<4x32xf32>
    %cst_89 = arith.constant 0.000000e+00 : f32
    %cst_90 = arith.constant 6.000000e+00 : f32
    %137 = vector.broadcast %cst_89 : f32 to vector<4x32xf32>
    %138 = arith.maximumf %137, %136 : vector<4x32xf32>
    %139 = vector.broadcast %cst_90 : f32 to vector<4x32xf32>
    %140 = arith.minimumf %139, %138 : vector<4x32xf32>
    %141 = arith.mulf %134, %140 : vector<4x32xf32>
    %cst_91 = arith.constant 0.166666672 : f32
    %142 = vector.broadcast %cst_91 : f32 to vector<4x32xf32>
    %143 = arith.mulf %141, %142 : vector<4x32xf32>
    %c0_92 = arith.constant 0 : index
    %c0_93 = arith.constant 0 : index
    %c0_94 = arith.constant 0 : index
    %144 = vector.load %arg9[%c0_92, %c0_93, %c0_94] : memref<2x32x64xf32, #tpu.memory_space<vmem>>, vector<1x32x64xf32>
    %145 = vector.shape_cast %144 : vector<1x32x64xf32> to vector<32x64xf32>
    %cst_95 = arith.constant dense<0.000000e+00> : vector<4x64xf32>
    %146 = tpu.matmul %143, %145, %cst_95 {dimension_numbers = #tpu.dot_dimension_numbers<[1], [0], [0], [1], [0, 0, 1, 1], [], []>} : vector<4x32xf32>, vector<32x64xf32>, vector<4x64xf32> -> vector<4x64xf32>
    %147 = vector.extract_strided_slice %44 {offsets = [4, 0], sizes = [4, 16], strides = [1, 1]} : vector<8x16xf32> to vector<4x16xf32>
    %148 = vector.extract_strided_slice %30 {offsets = [16, 0], sizes = [16, 16], strides = [1, 1]} : vector<32x16xf32> to vector<16x16xf32>
    %149 = vector.extract_strided_slice %37 {offsets = [16, 0], sizes = [16, 32], strides = [1, 1]} : vector<32x32xf32> to vector<16x32xf32>
    %cst_96 = arith.constant dense<0.000000e+00> : vector<4x16xf32>
    %150 = tpu.matmul %147, %148, %cst_96 {dimension_numbers = #tpu.dot_dimension_numbers<[1], [1], [0], [0], [0, 0, 1, 0], [], []>} : vector<4x16xf32>, vector<16x16xf32>, vector<4x16xf32> -> vector<4x16xf32>
    %cst_97 = arith.constant 2.500000e-01 : f32
    %151 = vector.broadcast %cst_97 : f32 to vector<4x16xf32>
    %152 = arith.mulf %150, %151 : vector<4x16xf32>
    %c1_98 = arith.constant 1 : index
    %c0_99 = arith.constant 0 : index
    %c0_100 = arith.constant 0 : index
    %153 = vector.load %arg8[%c1_98, %c0_99, %c0_100] : memref<2x4x16xf32, #tpu.memory_space<vmem>>, vector<1x4x16xf32>
    %154 = vector.shape_cast %153 : vector<1x4x16xf32> to vector<4x16xf32>
    %155 = arith.addf %152, %154 : vector<4x16xf32>
    %cst_101 = arith.constant dense<0xFF800000> : vector<4xf32>
    %156 = vector.multi_reduction <maximumf>, %155, %cst_101 [1] : vector<4x16xf32> to vector<4xf32>
    %157 = vector.shape_cast %156 : vector<4xf32> to vector<4x1xf32>
    %158 = vector.broadcast %157 : vector<4x1xf32> to vector<4x16xf32>
    %159 = arith.subf %155, %158 : vector<4x16xf32>
    %160 = math.exp %159 : vector<4x16xf32>
    %cst_102 = arith.constant dense<0.000000e+00> : vector<4xf32>
    %161 = vector.multi_reduction <add>, %160, %cst_102 [1] : vector<4x16xf32> to vector<4xf32>
    %162 = vector.shape_cast %161 : vector<4xf32> to vector<4x1xf32>
    %163 = tpu.reciprocal %162 : vector<4x1xf32> -> vector<4x1xf32>
    %164 = vector.broadcast %163 : vector<4x1xf32> to vector<4x16xf32>
    %165 = arith.mulf %160, %164 : vector<4x16xf32>
    %cst_103 = arith.constant dense<0.000000e+00> : vector<4x32xf32>
    %166 = tpu.matmul %165, %149, %cst_103 {dimension_numbers = #tpu.dot_dimension_numbers<[1], [0], [0], [1], [0, 0, 1, 1], [], []>} : vector<4x16xf32>, vector<16x32xf32>, vector<4x32xf32> -> vector<4x32xf32>
    %cst_104 = arith.constant 3.000000e+00 : f32
    %167 = vector.broadcast %cst_104 : f32 to vector<4x32xf32>
    %168 = arith.addf %166, %167 : vector<4x32xf32>
    %cst_105 = arith.constant 0.000000e+00 : f32
    %cst_106 = arith.constant 6.000000e+00 : f32
    %169 = vector.broadcast %cst_105 : f32 to vector<4x32xf32>
    %170 = arith.maximumf %169, %168 : vector<4x32xf32>
    %171 = vector.broadcast %cst_106 : f32 to vector<4x32xf32>
    %172 = arith.minimumf %171, %170 : vector<4x32xf32>
    %173 = arith.mulf %166, %172 : vector<4x32xf32>
    %cst_107 = arith.constant 0.166666672 : f32
    %174 = vector.broadcast %cst_107 : f32 to vector<4x32xf32>
    %175 = arith.mulf %173, %174 : vector<4x32xf32>
    %c1_108 = arith.constant 1 : index
    %c0_109 = arith.constant 0 : index
    %c0_110 = arith.constant 0 : index
    %176 = vector.load %arg9[%c1_108, %c0_109, %c0_110] : memref<2x32x64xf32, #tpu.memory_space<vmem>>, vector<1x32x64xf32>
    %177 = vector.shape_cast %176 : vector<1x32x64xf32> to vector<32x64xf32>
    %cst_111 = arith.constant dense<0.000000e+00> : vector<4x64xf32>
    %178 = tpu.matmul %175, %177, %cst_111 {dimension_numbers = #tpu.dot_dimension_numbers<[1], [0], [0], [1], [0, 0, 1, 1], [], []>} : vector<4x32xf32>, vector<32x64xf32>, vector<4x64xf32> -> vector<4x64xf32>
    %179 = arith.addf %146, %178 : vector<4x64xf32>
    %180 = vector.broadcast %2 : vector<1x64xf32> to vector<4x64xf32>
    %181 = arith.addf %179, %180 : vector<4x64xf32>
    %c1_112 = arith.constant 1 : index
    %c0_113 = arith.constant 0 : index
    %c0_114 = arith.constant 0 : index
    %182 = vector.load %arg11[%c1_112, %c0_113, %c0_114] : memref<2x4x64xf32, #tpu.memory_space<vmem>>, vector<1x4x64xf32>
    %183 = vector.shape_cast %182 : vector<1x4x64xf32> to vector<4x64xf32>
    %184 = vector.shape_cast %181 : vector<4x64xf32> to vector<1x4x64xf32>
    tpu.vector_store %arg11[%c1_112, %c0_113, %c0_114], %184 {strides = array<i32>} : memref<2x4x64xf32, #tpu.memory_space<vmem>>, vector<1x4x64xf32>,
    return
  }
}

</mosaic_0001>

<bundles_post_ra>
// kernel: tpu_custom_call.1
= control target key start
LH: loop header
LB: loop body
LE: loop exit
PB: predicated region body
PF: predicated region fallthrough
CT: control target
= control target key end

     0   :  { %16 = vsyncpa [#allocation3], 0  ;;  %s2568_s0 = inlined_call_operand.vmem [shape: f32[32,32], index: 0, kind: input, shape index: {}]   ;;  %s2569_s1 = inlined_call_operand.hbm [shape: f32[8,32], index: 1, kind: input, shape index: {}]   ;;  %s2570_s2 = inlined_call_operand.vmem [shape: f32[2,32,16], index: 2, kind: input, shape index: {}]   ;;  %s2571_s3 = inlined_call_operand.vmem [shape: f32[2,1,16], index: 3, kind: input, shape index: {}]   ;;  %s2572_s4 = inlined_call_operand.vmem [shape: f32[2,32,32], index: 4, kind: input, shape index: {}]   ;;  %s2573_s5 = inlined_call_operand.vmem [shape: f32[2,1,32], index: 5, kind: input, shape index: {}]   ;;  %s2574_s6 = inlined_call_operand.vmem [shape: f32[2,32,16], index: 6, kind: input, shape index: {}]   ;;  %s2575_s7 = inlined_call_operand.vmem [shape: f32[2,1,16], index: 7, kind: input, shape index: {}]   ;;  %s2576_s8 = inlined_call_operand.vmem [shape: f32[2,4,16], index: 8, kind: input, shape index: {}]   ;;  %s2577_s9 = inlined_call_operand.vmem [shape: f32[2,32,64], index: 9, kind: input, shape index: {}]   ;;  %s2578_s10 = inlined_call_operand.vmem [shape: f32[1,64], index: 10, kind: input, shape index: {}]   ;;  %s2579_s11 = inlined_call_operand.hbm [shape: f32[2,4,64], index: 11, kind: output, shape index: {}]  }
   0x1   :  { %17 = vsyncpa [#allocation4], 0  ;;  %s2151_s17 = smov [#allocation2]   ;;  %s2103_s21 = scalar_lea.hbm %s2569_s1, 128 }
   0x2   :  { %s26_s18 = sshll.u32 %s2151_s17, 4  ;;  %p2104_p0 = scmp.ne.s32.totalorder %s2569_s1, %s2103_s21  ;;  %s27_s18 = int_to_ptr.vmem [resolvable:$true] %s26_s18 }
   0x3   :  { %p2107_p1 = scmp.lt.u32.totalorder %s2103_s21, %s2569_s1 }
   0x5   :  { %p2109_p2 = pnand %p2107_p1, %p2104_p0 }
   0x7   :  { %2112 = shalt.err (!%p2109_p2)
}
   0x8   :  { %s2113_s26 = scalar_lea.vmem %s27_s18, 128  ;;  %p2118_p4 = scmp.lt.s32.totalorder %s27_s18, %s27_s18 }
   0x9   :  { %p2114_p3 = scmp.ne.s32.totalorder %s27_s18, %s2113_s26  ;;  %p2119_p5 = scmp.lt.s32.totalorder %s2113_s26, %s2113_s26 }
   0xb   :  { %p2120_p6 = por %p2119_p5, %p2118_p4 }
   0xd   :  { %p2121_p7 = pnand %p2120_p6, %p2114_p3 }
   0xf   :  { %2124 = shalt.err (!%p2121_p7)
}
  0x10   :  { %29 = dma.hbm_to_vmem [thread:$0]  %s2569_s1, 128, %s27_s18, [#allocation3]  }
  0x11   :  { %2147 = dma.done.wait [#allocation3], 128  }
  0x12   :  { %2148 = vsyncadd [#allocation3], 4294967168  ;;  %vm68_vm0 = vcmask 261120   ;;  %v57_v0 = vld [vmem:[%s2570_s2] sm:$0xff]  ;;  %v58_v1 = vld [vmem:[%s2570_s2 + $0x8] sm:$0xff]  ;;  %v2152_v11 = vmov 0.0|0.0  }
  0x13   :  { %v59_v2 = vld [vmem:[%s2570_s2 + $0x10] sm:$0xff]  ;;  %v1984_v3 = vpack.c.bf16 %v58_v1, %v57_v0  ;;  %v60_v4 = vld [vmem:[%s2570_s2 + $0x18] sm:$0xff]  ;;  %v2245_v5 = vld [vmem:[%s2568_s0] sm:$0xff]  ;;  %vm2153_vm1 = vmmov 0   ;;  %v2154_v22 = vmov 0.0   ;;  %vm625_vm2 = vcmask 130048  }
  0x14   :  { %v1988_v6 = vpack.c.bf16 %v60_v4, %v59_v2  ;;  %1814 = vmatprep.mubr.msk.f32.mxu0 %vm68_vm0, %v2245_v5  ;;  %1828 = vmatprep.mubr.msk.f32.mxu1 %vm68_vm0, %v2245_v5  ;;  %v262_v7 = vld [vmem:[%s2574_s6] sm:$0xff]  ;;  %v263_v8 = vld [vmem:[%s2574_s6 + $0x8] sm:$0xff]  ;;  %v2266_v12 = vld [vmem:[%s2568_s0 + $0x10] sm:$0xff]  ;;  %vm708_vm4 = vcmask 125952   ;;  %vm1132_vm5 = vcmask 519168  }
  0x15   :  { %1985 = vmatprep.subr.bf16.mxu0 %v1984_v3  ;;  %v2260_v9 = vld [vmem:[%s2568_s0 + $0x8] sm:$0xff]  ;;  %v2001_v10 = vpack.c.bf16 %v263_v8, %v262_v7  ;;  %v264_v13 = vld [vmem:[%s2574_s6 + $0x10] sm:$0xff]  ;;  %v265_v14 = vld [vmem:[%s2574_s6 + $0x18] sm:$0xff] }
  0x16   :  { %1987 = vmatpush3.bf16.msra.mxu0 %v1984_v3  ;;  %v1672_v15 = vld [vmem:[%s2572_s4 + $0x20] sm:$0xff]  ;;  %v1673_v16 = vld [vmem:[%s2572_s4 + $0x28] sm:$0xff]  ;;  %v2287_v17 = vld [vmem:[%s2568_s0 + $0x18] sm:$0xff]  ;;  %v2004_v18 = vpack.c.bf16 %v265_v14, %v264_v13 }
  0x17   :  { %1989 = vmatprep.subr.bf16.mxu0 %v1988_v6  ;;  %v2014_v19 = vpack.c.bf16 %v1673_v16, %v1672_v15  ;;  %v1674_v20 = vld [vmem:[%s2572_s4 + $0x30] sm:$0xff]  ;;  %v1675_v21 = vld [vmem:[%s2572_s4 + $0x38] sm:$0xff]  ;;  %v2300_v23 = vld [vmem:[#allocation2] sm:$0xff] }
  0x18   :  { %v2018_v24 = vpack.c.bf16 %v1675_v21, %v1674_v20  ;;  %v1650_v25 = vld [vmem:[%s2571_s3] ss:$0 sm:$0xff]  ;;  %vm2320_vm3 = vmpackc.low %vm625_vm2, %vm625_vm2  ;;  %v1677_v41 = vld [vmem:[%s2573_s5 + $0x1] ss:$0 sm:$0xff] }
  0x19   :  { %v1660_v36 = vld [vmem:[%s2575_s7] ss:$0 sm:$0xff]  ;;  %v167_v53 = vld [vmem:[%s2572_s4 + $0x8] sm:$0xff]  ;;  %v168_v54 = vld [vmem:[%s2572_s4 + $0x10] sm:$0xff] }
  0x1a   :  { %1991 = vmatpush3.bf16.msra.mxu0 %v1988_v6  ;;  %v166_v52 = vld [vmem:[%s2572_s4] sm:$0xff]  ;;  %v169_v56 = vld [vmem:[%s2572_s4 + $0x18] sm:$0xff]  ;;  %v1663_v59 = vld [vmem:[%s2570_s2 + $0x28] sm:$0xff] }
  0x1b   :  { %2000 = vmatprep.subr.bf16.mxu0 %v2152_v11  ;;  %v1992_v55 = vpack.c.bf16 %v167_v53, %v166_v52  ;;  %v1996_v57 = vpack.c.bf16 %v169_v56, %v168_v54  ;;  %v1662_v58 = vld [vmem:[%s2570_s2 + $0x20] sm:$0xff]  ;;  %v1664_v61 = vld [vmem:[%s2570_s2 + $0x30] sm:$0xff]  ;;  %v1665_v62 = vld [vmem:[%s2570_s2 + $0x38] sm:$0xff] }
  0x1c   :  { %v2006_v60 = vpack.c.bf16 %v1663_v59, %v1662_v58  ;;  %v2010_v63 = vpack.c.bf16 %v1665_v62, %v1664_v61  ;;  %v1682_v0 = vld [vmem:[%s2574_s6 + $0x20] sm:$0xff]  ;;  %v1683_v1 = vld [vmem:[%s2574_s6 + $0x28] sm:$0xff]  ;;  %v1684_v3 = vld [vmem:[%s2574_s6 + $0x30] sm:$0xff] }
  0x1d   :  { %1815 = vmatmul.mubr.msk.f32.vlgmr.msra.gmra.mrb[0].mxu0 %vm68_vm0, %v2260_v9  ;;  %1993 = vmatprep.subr.bf16.mxu1 %v1992_v55  ;;  %v2023_v2 = vpack.c.bf16 %v1683_v1, %v1682_v0  ;;  %v1685_v4 = vld [vmem:[%s2574_s6 + $0x38] sm:$0xff]  ;;  %v706_v7 = vld [vmem:[%s2576_s8] sm:$0xf]  ;;  %v800_v59 = vld [vmem:[%s2577_s9 + $0x10] sm:$0xff] }
  0x1e   :  { %2002 = vmatpush3.bf16.msra.mxu0 %v2001_v10  ;;  %1817 = vmatprep.mubr.msk.f32.mxu0 %vm68_vm0, %v2266_v12  ;;  %v2026_v6 = vpack.c.bf16 %v1685_v4, %v1684_v3  ;;  %v1655_v13 = vld [vmem:[%s2573_s5] ss:$0 sm:$0xff]  ;;  %v1687_v54 = vld [vmem:[%s2575_s7 + $0x1] ss:$0 sm:$0xff] }
  0x1f   :  { %2003 = vmatprep.subr.bf16.mxu0 %v2152_v11  ;;  %1995 = vmatpush3.bf16.msra.mxu1 %v1992_v55  ;;  %v798_v56 = vld [vmem:[%s2577_s9] sm:$0xff] }
  0x20   :  { %1997 = vmatprep.subr.bf16.mxu1 %v1996_v57 }
  0x21   :  { %1818 = vmatmul.mubr.msk.f32.gmra.mrb[2].mxu0 %vm68_vm0, %v2287_v17 }
  0x22   :  { %2005 = vmatpush3.bf16.msra.mxu0 %v2004_v18  ;;  %1842 = vmatprep.mubr.msk.f32.mxu0 %vm2153_vm1, %v2154_v22 }
  0x23   :  { %2015 = vmatprep.subr.bf16.mxu0 %v2014_v19  ;;  %1999 = vmatpush3.bf16.msra.mxu1 %v1996_v57  ;;  %v799_v57 = vld [vmem:[%s2577_s9 + $0x8] sm:$0xff] }
  0x24   :  { %2007 = vmatprep.subr.bf16.mxu1 %v2006_v60  ;;  %v2450_v58 = vpack.c.bf16 %v799_v57, %v798_v56 }
  0x25   :  { %1843 = vmatmul.mubr.msk.f32.vlgmr.msra.gmra.mrb[4].mxu0 %vm68_vm0, %v2300_v23 }
  0x26   :  { %2017 = vmatpush3.bf16.msra.mxu0 %v2014_v19  ;;  %1867 = vmatprep.mubr.msk.f32.mxu0 %vm68_vm0, %v2245_v5 }
  0x27   :  { %2019 = vmatprep.subr.bf16.mxu0 %v2018_v24  ;;  %1829 = vmatmul.mubr.msk.f32.vlgmr.msra.gmra.mrb[0].mxu1 %vm68_vm0, %v2260_v9 }
  0x28   :  { %2009 = vmatpush3.bf16.msra.mxu1 %v2006_v60  ;;  %1831 = vmatprep.mubr.msk.f32.mxu1 %vm68_vm0, %v2266_v12  ;;  %v801_v60 = vld [vmem:[%s2577_s9 + $0x18] sm:$0xff] }
  0x29   :  { %2011 = vmatprep.subr.bf16.mxu1 %v2010_v63  ;;  %v2460_v61 = vpack.c.bf16 %v801_v60, %v800_v59 }
  0x2a   :  { %2021 = vmatpush3.bf16.msra.mxu0 %v2018_v24 }
  0x2b   :  { %2028 = vmatprep.subr.bf16.mxu0 %v2152_v11  ;;  %1832 = vmatmul.mubr.msk.f32.gmra.mrb[2].mxu1 %vm68_vm0, %v2287_v17 }
  0x2c   :  { %2013 = vmatpush3.bf16.msra.mxu1 %v2010_v63  ;;  %1853 = vmatprep.mubr.msk.f32.mxu1 %vm68_vm0, %v2245_v5 }
  0x2d   :  { %1868 = vmatmul.mubr.msk.f32.vlgmr.msra.gmra.mrb[6].mxu0 %vm68_vm0, %v2260_v9  ;;  %2022 = vmatprep.subr.bf16.mxu1 %v2152_v11 }
  0x2e   :  { %1870 = vmatprep.mubr.msk.f32.mxu0 %vm68_vm0, %v2266_v12 }
  0x2f   :  { %1854 = vmatmul.mubr.msk.f32.vlgmr.msra.gmra.mrb[4].mxu1 %vm68_vm0, %v2260_v9 }
  0x30   :  { %2024 = vmatpush3.bf16.msra.mxu1 %v2023_v2  ;;  %1856 = vmatprep.mubr.msk.f32.mxu1 %vm68_vm0, %v2266_v12 }
  0x31   :  { %1871 = vmatmul.mubr.msk.f32.gmra.mrb[8].mxu0 %vm68_vm0, %v2287_v17  ;;  %2025 = vmatprep.subr.bf16.mxu1 %v2152_v11 }
  0x32   :  { %1888 = vmatprep.mubr.msk.f32.mxu0 %vm2153_vm1, %v2154_v22 }
  0x33   :  { %1857 = vmatmul.mubr.msk.f32.gmra.mrb[6].mxu1 %vm68_vm0, %v2287_v17 }
  0x34   :  { %2027 = vmatpush3.bf16.msra.mxu1 %v2026_v6  ;;  %1881 = vmatprep.mubr.msk.f32.mxu1 %vm2153_vm1, %v2154_v22  ;;  %v1696_v6 = vld [vmem:[%s2576_s8 + $0x4] sm:$0xf] }
  0x35   :  { %2032 = vmatprep.subr.bf16.mxu1 %v2152_v11 }
  0x37   :  { %1882 = vmatmul.mubr.msk.f32.vlgmr.msra.gmra.mrb[8].mxu1 %vm68_vm0, %v2300_v23 }
  0x38   :  { %1895 = vmatprep.mubr.msk.f32.mxu1 %vm2153_vm1, %v2154_v22 }
  0xf0   :  { %v1816_v26 = vpop.f32.mrb[0].mxu0 }
  0xf1   :  { %v153_v27 = vadd.f32 %v1816_v26, %v1650_v25  ;;  %v147_v28 = vpop.f32.mrb[1].mxu0 }
  0xf2   :  { %v148_v29 = vadd.f32 %v1650_v25, %v147_v28 }
  0xf4   :  { %v2029_v31 = vpack.c.bf16 %v153_v27, %v148_v29  ;;  %v1819_v32 = vpop.f32.mrb[2].mxu0 }
  0xf5   :  { %v2324_v33 = vadd.f32 %v1819_v32, %v1650_v25  ;;  %v157_v34 = vpop.f32.mrb[3].mxu0  ;;  %v1667_v32 = vld [vmem:[%s2571_s3 + $0x1] ss:$0 sm:$0xff] }
  0xf6   :  { %2031 = vmatpush3.bf16.xpose.msk.msra.mxu0 %vm2320_vm3, %v2029_v31  ;;  %v2328_v35 = vadd.f32 %v1650_v25, %v157_v34 }
  0xf7   :  { %2039 = vmatprep.subr.bf16.mxu0 %v2152_v11 }
  0xf8   :  { %v2055_v37 = vpack.c.bf16 %v2324_v33, %v2328_v35  ;;  %v342_v38 = vpop.f32.mrb[4].mxu0  ;;  %v2516_v33 = vld [vmem:[%s2578_s10] ss:$0 sm:$0xff] }
  0xf9   :  { %v2336_v39 = vadd.f32 %v1660_v36, %v342_v38  ;;  %v1844_v40 = vpop.f32.mrb[5].mxu0 }
  0xfa   :  { %v1830_v14 = vpop.f32.mrb[0].mxu1 }
  0xfb   :  { %v249_v15 = vadd.f32 %v1830_v14, %v1655_v13  ;;  %v243_v16 = vpop.f32.mrb[1].mxu1 }
  0xfc   :  { %v244_v17 = vadd.f32 %v1655_v13, %v243_v16 }
  0xfd   :  { %1889 = vmatmul.mubr.msk.f32.vlgmr.msra.gmra.mrb[10].mxu0 %vm625_vm2, %v2336_v39 }
  0xfe   :  { %1909 = vmatprep.mubr.msk.f32.mxu0 %vm2153_vm1, %v2154_v22  ;;  %v2033_v18 = vpack.c.bf16 %v249_v15, %v244_v17  ;;  %v1833_v25 = vpop.f32.mrb[2].mxu1 }
  0xff   :  { %v253_v26 = vpop.f32.mrb[3].mxu1  ;;  %v259_v27 = vadd.f32 %v1833_v25, %v1655_v13 }
 0x100   :  { %v1869_v42 = vpop.f32.mrb[6].mxu0  ;;  %2034 = vmatpush3.bf16.msra.mxu1 %v2033_v18  ;;  %v254_v28 = vadd.f32 %v1655_v13, %v253_v26  ;;  %v1700_v26 = vld [vmem:[%s2577_s9 + $0x30] sm:$0xff] }
 0x101   :  { %v529_v43 = vadd.f32 %v1869_v42, %v1677_v41  ;;  %v523_v44 = vpop.f32.mrb[7].mxu0  ;;  %2035 = vmatprep.subr.bf16.mxu1 %v2152_v11 }
 0x102   :  { %v524_v45 = vadd.f32 %v1677_v41, %v523_v44  ;;  %v2059_v29 = vpack.c.bf16 %v259_v27, %v254_v28  ;;  %v1855_v31 = vpop.f32.mrb[4].mxu1  ;;  %v1701_v27 = vld [vmem:[%s2577_s9 + $0x38] sm:$0xff] }
 0x103   :  { %v425_v34 = vpop.f32.mrb[5].mxu1  ;;  %v431_v36 = vadd.f32 %v1855_v31, %v1667_v32  ;;  %v2492_v28 = vpack.c.bf16 %v1701_v27, %v1700_v26 }
 0x104   :  { %v2040_v46 = vpack.c.bf16 %v529_v43, %v524_v45  ;;  %v1872_v47 = vpop.f32.mrb[8].mxu0  ;;  %v426_v38 = vadd.f32 %v1667_v32, %v425_v34 }
 0x105   :  { %v2345_v48 = vadd.f32 %v1872_v47, %v1677_v41  ;;  %v533_v49 = vpop.f32.mrb[9].mxu0 }
 0x106   :  { %v2347_v50 = vadd.f32 %v1677_v41, %v533_v49  ;;  %2041 = vmatpush3.bf16.msra.mxu0 %v2040_v46  ;;  %v2036_v40 = vpack.c.bf16 %v431_v36, %v426_v38  ;;  %v1858_v41 = vpop.f32.mrb[6].mxu1 }
 0x107   :  { %2042 = vmatprep.subr.bf16.mxu0 %v2152_v11  ;;  %v2423_v42 = vadd.f32 %v1858_v41, %v1667_v32  ;;  %v435_v43 = vpop.f32.mrb[7].mxu1  ;;  %v1134_v41 = vrot.slane %v2336_v39, 4 }
 0x108   :  { %v2066_v51 = vpack.c.bf16 %v2345_v48, %v2347_v50  ;;  %v2425_v44 = vadd.f32 %v1667_v32, %v435_v43  ;;  %v1214_v50 = vld [vmem:[%s2576_s8] sm:$0xf] }
 0x10a   :  { %v621_v45 = vpop.f32.mrb[8].mxu1  ;;  %v2062_v47 = vpack.c.bf16 %v2423_v42, %v2425_v44 }
 0x10b   :  { %v1883_v46 = vpop.f32.mrb[9].mxu1  ;;  %v2438_v55 = vadd.f32 %v1687_v54, %v621_v45 }
 0x1d0   :  { %v701_v5 = vpop.f32.mrb[10].mxu0 }
 0x1d1   :  { %v705_v8 = vmul.f32 0.25, %v701_v5  ;;  %v1890_v9 = vpop.f32.mrb[11].mxu0 }
 0x1d3   :  { %v707_v10 = vadd.f32 %v706_v7, %v705_v8 }
 0x1d5   :  { %v709_v12 = vsel %vm708_vm4, %v707_v10, -inf }
 0x1d6   :  { %710 = vmax.xlane.f32.xlu0 %v709_v12 }
 0x263   :  { %v711_v19 = vpop.xlane.xlu0 %710 }
 0x264   :  { %v712_v20 = vsub.f32 %v707_v10, %v711_v19 }
 0x266   :  { %v713_v21 = vmul.f32 1.442695, %v712_v20  ;;  %v1698_v20 = vld [vmem:[%s2577_s9 + $0x20] sm:$0xff] }
 0x268   :  { %2087 = vpow2.f32 %v713_v21  ;;  %v1699_v21 = vld [vmem:[%s2577_s9 + $0x28] sm:$0xff] }
 0x272   :  { %v2088_v23 = vpop.eup %2087 }
 0x273   :  { %v715_v24 = vsel %vm708_vm4, %v2088_v23, 0.0 }
 0x274   :  { %716 = vadd.xlane.f32.xlu0 %v715_v24  ;;  %v2479_v24 = vpack.c.bf16 %v1699_v21, %v1698_v20 }
 0x301   :  { %v717_v49 = vpop.xlane.xlu0 %716 }
 0x302   :  { %2089 = vrcp.f32 %v717_v49 }
 0x30c   :  { %v2090_v52 = vpop.eup %2089 }
 0x30d   :  { %v719_v53 = vmul.f32 %v2090_v52, %v2088_v23 }
 0x30f   :  { %1896 = vmatmul.mubr.msk.f32.vlgmr.msra.gmra.mrb[10].mxu1 %vm625_vm2, %v719_v53 }
 0x310   :  { %2038 = vmatpush3.bf16.xpose.msk.msra.mxu1 %vm2320_vm3, %v2036_v40  ;;  %1902 = vmatprep.mubr.msk.f32.mxu1 %vm2153_vm1, %v2154_v22 }
 0x311   :  { %2048 = vmatprep.subr.bf16.mxu1 %v2152_v11 }
 0x317   :  { %1903 = vmatmul.mubr.msk.f32.vlgmr.msra.gmra.mrb[12].mxu1 %vm625_vm2, %v2438_v55 }
 0x318   :  { %1931 = vmatprep.mubr.msk.f32.mxu1 %vm2153_vm1, %v2154_v22  ;;  %2050 = vmatpush3.bf16.msra.mxu1 %v2450_v58 }
 0x319   :  { %2051 = vmatprep.subr.bf16.mxu1 %v2152_v11 }
 0x31c   :  { %2053 = vmatpush3.bf16.msra.mxu1 %v2460_v61 }
 0x31d   :  { %2058 = vmatprep.subr.bf16.mxu1 %v2152_v11 }
 0x3e2   :  { %v789_v62 = vpop.f32.mrb[10].mxu1 }
 0x3e3   :  { %v793_v63 = vadd.f32 3.0, %v789_v62  ;;  %v1897_v0 = vpop.f32.mrb[11].mxu1 }
 0x3e5   :  { %v794_v1 = vmax.f32 %v793_v63, 0.0  ;;  %v1309_v63 = vrot.slane %v2438_v55, 4  ;;  %v1712_v55 = vld [vmem:[%s2576_s8 + $0x4] sm:$0xf]  ;;  %s2155_s8 = smov [#allocation5]  }
 0x3e6   :  { %s1638_s29 = sshll.u32 %s2155_s8, 4  ;;  %s1639_s29 = int_to_ptr.vmem [resolvable:$true] %s1638_s29 }
 0x3e7   :  { %v795_v2 = vmin.f32 %v794_v1, 6.0  ;;  %s2125_s5 = scalar_lea.vmem %s1639_s29, 128  ;;  %p2130_p9 = scmp.lt.s32.totalorder %s1639_s29, %s1639_s29 }
 0x3e8   :  { %p2126_p8 = scmp.ne.s32.totalorder %s1639_s29, %s2125_s5  ;;  %p2131_p10 = scmp.lt.s32.totalorder %s2125_s5, %s2125_s5 }
 0x3e9   :  { %v796_v3 = vmul.f32 %v795_v2, %v789_v62 }
 0x3ea   :  { %v877_v4 = vpop.f32.mrb[12].mxu1  ;;  %p2132_p11 = por %p2131_p10, %p2130_p9 }
 0x3eb   :  { %v797_v5 = vmul.f32 0.16666667, %v796_v3  ;;  %v881_v7 = vmul.f32 0.25, %v877_v4  ;;  %v1904_v8 = vpop.f32.mrb[13].mxu1 }
 0x3ec   :  { %p2133_p12 = pnand %p2132_p11, %p2126_p8 }
 0x3ed   :  { %1932 = vmatmul.mubr.msk.f32.vlgmr.msra.gmra.mrb[14].mxu1 %vm68_vm0, %v797_v5  ;;  %v884_v9 = vadd.f32 %v1696_v6, %v881_v7 }
 0x3ee   :  { %2060 = vmatpush3.bf16.msra.mxu1 %v2059_v29  ;;  %1945 = vmatprep.mubr.msk.f32.mxu1 %vm2153_vm1, %v2154_v22 }
 0x3ef   :  { %v885_v10 = vsel %vm708_vm4, %v884_v9, -inf  ;;  %2061 = vmatprep.subr.bf16.mxu1 %v2152_v11 }
 0x3f0   :  { %886 = vmax.xlane.f32.xlu1 %v885_v10 }
 0x47d   :  { %v887_v12 = vpop.xlane.xlu1 %886 }
 0x47e   :  { %v888_v13 = vsub.f32 %v884_v9, %v887_v12 }
 0x480   :  { %v889_v14 = vmul.f32 1.442695, %v888_v13 }
 0x482   :  { %2091 = vpow2.f32 %v889_v14 }
 0x48c   :  { %v2092_v15 = vpop.eup %2091 }
 0x48d   :  { %v891_v16 = vsel %vm708_vm4, %v2092_v15, 0.0 }
 0x48e   :  { %892 = vadd.xlane.f32.xlu1 %v891_v16 }
 0x4c0   :  { %v1121_v17 = vpop.f32.mrb[14].mxu1 }
 0x4c1   :  { %v1933_v18 = vpop.f32.mrb[15].mxu1 }
 0x51b   :  { %v893_v19 = vpop.xlane.xlu1 %892 }
 0x51c   :  { %2093 = vrcp.f32 %v893_v19 }
 0x526   :  { %v2094_v23 = vpop.eup %2093 }
 0x527   :  { %v895_v25 = vmul.f32 %v2094_v23, %v2092_v15 }
 0x529   :  { %1910 = vmatmul.mubr.msk.f32.vlgmr.msra.gmra.mrb[12].mxu0 %vm625_vm2, %v895_v25 }
 0x52a   :  { %2044 = vmatpush3.bf16.msra.mxu0 %v2479_v24  ;;  %1920 = vmatprep.mubr.msk.f32.mxu0 %vm2153_vm1, %v2154_v22 }
 0x52b   :  { %2045 = vmatprep.subr.bf16.mxu0 %v2152_v11 }
 0x52e   :  { %2047 = vmatpush3.bf16.msra.mxu0 %v2492_v28 }
 0x52f   :  { %2054 = vmatprep.subr.bf16.mxu0 %v2152_v11 }
 0x5fc   :  { %v965_v29 = vpop.f32.mrb[12].mxu0 }
 0x5fd   :  { %v969_v31 = vadd.f32 3.0, %v965_v29  ;;  %v1911_v32 = vpop.f32.mrb[13].mxu0 }
 0x5ff   :  { %v970_v34 = vmax.f32 %v969_v31, 0.0 }
 0x601   :  { %v971_v36 = vmin.f32 %v970_v34, 6.0 }
 0x603   :  { %v972_v38 = vmul.f32 %v971_v36, %v965_v29 }
 0x605   :  { %v973_v40 = vmul.f32 0.16666667, %v972_v38 }
 0x607   :  { %1921 = vmatmul.mubr.msk.f32.vlgmr.msra.gmra.mrb[14].mxu0 %vm68_vm0, %v973_v40 }
 0x608   :  { %2057 = vmatpush3.bf16.xpose.msk.msra.mxu0 %vm2320_vm3, %v2055_v37  ;;  %1938 = vmatprep.mubr.msk.f32.mxu0 %vm2153_vm1, %v2154_v22 }
 0x609   :  { %2065 = vmatprep.subr.bf16.mxu0 %v2152_v11 }
 0x60f   :  { %1939 = vmatmul.mubr.msk.f32.vlgmr.msra.gmra.mrb[16].mxu0 %vm625_vm2, %v1134_v41 }
 0x610   :  { %2067 = vmatpush3.bf16.msra.mxu0 %v2066_v51  ;;  %1959 = vmatprep.mubr.msk.f32.mxu0 %vm2153_vm1, %v2154_v22 }
 0x611   :  { %2068 = vmatprep.subr.bf16.mxu0 %v2152_v11 }
 0x6da   :  { %v1048_v35 = vpop.f32.mrb[14].mxu0 }
 0x6db   :  { %v1122_v37 = vadd.f32 %v1121_v17, %v1048_v35  ;;  %v1922_v43 = vpop.f32.mrb[15].mxu0 }
 0x6dd   :  { %v1131_v39 = vadd.f32 %v2516_v33, %v1122_v37 }
 0x6df   :  { %1133 = vst.msk [vmem:[#allocation5] sm:$0xf] %vm1132_vm5, %v1131_v39 }
 0x6e2   :  { %v1209_v48 = vpop.f32.mrb[16].mxu0 }
 0x6e3   :  { %v1213_v51 = vmul.f32 0.25, %v1209_v48  ;;  %v1940_v45 = vpop.f32.mrb[17].mxu0 }
 0x6e5   :  { %v1215_v46 = vadd.f32 %v1214_v50, %v1213_v51 }
 0x6e7   :  { %v1216_v49 = vsel %vm708_vm4, %v1215_v46, -inf }
 0x6e8   :  { %1217 = vmax.xlane.f32.xlu0 %v1216_v49 }
 0x775   :  { %v1218_v52 = vpop.xlane.xlu0 %1217 }
 0x776   :  { %v1219_v53 = vsub.f32 %v1215_v46, %v1218_v52 }
 0x778   :  { %v1220_v54 = vmul.f32 1.442695, %v1219_v53 }
 0x77a   :  { %2095 = vpow2.f32 %v1220_v54 }
 0x784   :  { %v2096_v56 = vpop.eup %2095 }
 0x785   :  { %v1222_v57 = vsel %vm708_vm4, %v2096_v56, 0.0 }
 0x786   :  { %1223 = vadd.xlane.f32.xlu1 %v1222_v57 }
 0x813   :  { %v1224_v59 = vpop.xlane.xlu1 %1223 }
 0x814   :  { %2097 = vrcp.f32 %v1224_v59 }
 0x81e   :  { %v2098_v60 = vpop.eup %2097 }
 0x81f   :  { %v1226_v62 = vmul.f32 %v2098_v60, %v2096_v56 }
 0x821   :  { %1946 = vmatmul.mubr.msk.f32.vlgmr.msra.gmra.mrb[16].mxu1 %vm625_vm2, %v1226_v62 }
 0x822   :  { %2064 = vmatpush3.bf16.xpose.msk.msra.mxu1 %vm2320_vm3, %v2062_v47  ;;  %1952 = vmatprep.mubr.msk.f32.mxu1 %vm2153_vm1, %v2154_v22 }
 0x823   :  { %2074 = vmatprep.subr.bf16.mxu1 %v2152_v11 }
 0x829   :  { %1953 = vmatmul.mubr.msk.f32.vlgmr.msra.gmra.mrb[18].mxu1 %vm625_vm2, %v1309_v63 }
 0x82a   :  { %2076 = vmatpush3.bf16.msra.mxu1 %v2450_v58  ;;  %1981 = vmatprep.mubr.msk.f32.mxu1 %vm2153_vm1, %v2154_v22 }
 0x82b   :  { %2077 = vmatprep.subr.bf16.mxu1 %v2152_v11 }
 0x82e   :  { %2079 = vmatpush3.bf16.msra.mxu1 %v2460_v61 }
 0x8f4   :  { %v1296_v30 = vpop.f32.mrb[16].mxu1 }
 0x8f5   :  { %v1300_v42 = vadd.f32 3.0, %v1296_v30  ;;  %v1947_v44 = vpop.f32.mrb[17].mxu1 }
 0x8f7   :  { %v1301_v47 = vmax.f32 %v1300_v42, 0.0 }
 0x8f9   :  { %v1302_v0 = vmin.f32 %v1301_v47, 6.0 }
 0x8fb   :  { %v1303_v1 = vmul.f32 %v1302_v0, %v1296_v30 }
 0x8fc   :  { %v1384_v2 = vpop.f32.mrb[18].mxu1 }
 0x8fd   :  { %v1304_v3 = vmul.f32 0.16666667, %v1303_v1  ;;  %v1388_v58 = vmul.f32 0.25, %v1384_v2  ;;  %v1954_v4 = vpop.f32.mrb[19].mxu1 }
 0x8ff   :  { %1982 = vmatmul.mubr.msk.f32.vlgmr.msra.gmra.mrb[20].mxu1 %vm68_vm0, %v1304_v3  ;;  %v1390_v6 = vadd.f32 %v1712_v55, %v1388_v58 }
 0x901   :  { %v1391_v5 = vsel %vm708_vm4, %v1390_v6, -inf }
 0x902   :  { %1392 = vmax.xlane.f32.xlu0 %v1391_v5 }
 0x98f   :  { %v1393_v61 = vpop.xlane.xlu0 %1392 }
 0x990   :  { %v1394_v7 = vsub.f32 %v1390_v6, %v1393_v61 }
 0x992   :  { %v1395_v8 = vmul.f32 1.442695, %v1394_v7 }
 0x994   :  { %2099 = vpow2.f32 %v1395_v8 }
 0x99e   :  { %v2100_v9 = vpop.eup %2099 }
 0x99f   :  { %v1397_v10 = vsel %vm708_vm4, %v2100_v9, 0.0 }
 0x9a0   :  { %1398 = vadd.xlane.f32.xlu1 %v1397_v10 }
 0x9d2   :  { %v1626_v12 = vpop.f32.mrb[20].mxu1 }
 0x9d3   :  { %v1983_v13 = vpop.f32.mrb[21].mxu1 }
 0xa2d   :  { %v1399_v14 = vpop.xlane.xlu1 %1398 }
 0xa2e   :  { %2101 = vrcp.f32 %v1399_v14 }
 0xa38   :  { %v2102_v15 = vpop.eup %2101 }
 0xa39   :  { %v1401_v16 = vmul.f32 %v2102_v15, %v2100_v9 }
 0xa3b   :  { %1960 = vmatmul.mubr.msk.f32.vlgmr.msra.gmra.mrb[18].mxu0 %vm625_vm2, %v1401_v16 }
 0xa3c   :  { %2070 = vmatpush3.bf16.msra.mxu0 %v2479_v24  ;;  %1970 = vmatprep.mubr.msk.f32.mxu0 %vm2153_vm1, %v2154_v22 }
 0xa3d   :  { %2071 = vmatprep.subr.bf16.mxu0 %v2152_v11 }
 0xa40   :  { %2073 = vmatpush3.bf16.msra.mxu0 %v2492_v28 }
 0xb0e   :  { %v1471_v17 = vpop.f32.mrb[18].mxu0 }
 0xb0f   :  { %v1475_v18 = vadd.f32 3.0, %v1471_v17  ;;  %v1961_v19 = vpop.f32.mrb[19].mxu0 }
 0xb11   :  { %v1476_v20 = vmax.f32 %v1475_v18, 0.0 }
 0xb13   :  { %v1477_v21 = vmin.f32 %v1476_v20, 6.0 }
 0xb15   :  { %v1478_v23 = vmul.f32 %v1477_v21, %v1471_v17 }
 0xb17   :  { %v1479_v25 = vmul.f32 0.16666667, %v1478_v23 }
 0xb19   :  { %1971 = vmatmul.mubr.msk.f32.vlgmr.msra.gmra.mrb[20].mxu0 %vm68_vm0, %v1479_v25 }
 0xbec   :  { %v1553_v26 = vpop.f32.mrb[20].mxu0 }
 0xbed   :  { %v1627_v24 = vadd.f32 %v1626_v12, %v1553_v26  ;;  %v1972_v27 = vpop.f32.mrb[21].mxu0 }
 0xbef   :  { %v1630_v22 = vadd.f32 %v2516_v33, %v1627_v24 }
 0xbf1   :  { %1632 = vst.msk [vmem:[#allocation5 + $0x4] sm:$0xf] %vm1132_vm5, %v1630_v22 }
 0xbf2   :  { %2136 = shalt.err (!%p2133_p12)
}
 0xbf3   :  { %s2137_s12 = scalar_lea.hbm %s2579_s11, 128 }
 0xbf4   :  { %p2138_p13 = scmp.ne.s32.totalorder %s2579_s11, %s2137_s12  ;;  %p2141_p0 = scmp.lt.u32.totalorder %s2137_s12, %s2579_s11 }
 0xbf6   :  { %p2143_p1 = pnand %p2141_p0, %p2138_p13 }
 0xbf8   :  { %2146 = shalt.err (!%p2143_p1)
}
 0xbf9   :  { %s2156_s7 = smov 64   ;;  %s2157_s17 = smov 4  }
 0xbfa   :  { %1644 = dma.vmem_to_hbm [thread:$0]  %s1639_s29, 128, %s2579_s11, [#allocation4], %s2156_s7, %s2156_s7, %s2157_s17  }
 0xbfb   :  { %2149 = dma.done.wait [#allocation4], 128  }
 0xbfc   :  { %2150 = vsyncadd [#allocation4], 4294967168 }
 0xbfd   :  { %1648 = vsyncpa [#allocation3], 1 }
 0xbfe   :  { %1649 = vsyncpa [#allocation4], 1 }

</bundles_post_ra>
